<compile_context>
chip_gen: v6e
topology: v6e:2x2x1
jax: 0.10.0
libtpu: 0.0.40
codegen_flags: <defaults>
</compile_context>

<pallas_src>
import jax
import jax.numpy as jnp
from jax import lax
from jax.experimental import pallas as pl
from jax.experimental.pallas import tpu as pltpu


# ---------------------------------------------------------------------------
# Stage 1 kernel: relu2( conv1x1x1( relu1(bn1(x)) ) * s2 + b2 ), s2 pre-folded
# into the conv weight.  x block is (TM, C_in) channels-last.
# ---------------------------------------------------------------------------
def _stage1_kernel(x_ref, s1_ref, b1_ref, w1_ref, b2_ref, o_ref):
    x = x_ref[...]                                         # (TM, C_in)
    h = jnp.maximum(x * s1_ref[...] + b1_ref[...], 0.0)    # BN1 + ReLU1
    y = jnp.dot(h, w1_ref[...],
                preferred_element_type=jnp.float32) + b2_ref[...]
    o_ref[...] = jnp.maximum(y, 0.0).astype(o_ref.dtype)   # BN2 (folded) + ReLU2


# ---------------------------------------------------------------------------
# Stage 2 kernel: 3x3x3 conv, grid = (N, D, kd).  kd is a reduction axis.
#   a_ref   : (1, 1, H, W, C_mid)     one un-padded depth slice of the activation
#   w_ref   : (3, 3, 3*C_mid, C_out)  [kd, kh, (kw, c), o] -- VMEM resident
#   o_ref   : (1, 1, H, W, C_out)
#   acc_ref : (H*W, C_out) f32        accumulator across the kd reduction
#   pad_ref : (H+2, W+2, C_mid) f32   zero-bordered staging slab (H/W halo)
# ---------------------------------------------------------------------------
def _conv3x3x3_kernel(a_ref, w_ref, o_ref, acc_ref, pad_ref):
    _, _, H, W, C_mid = a_ref.shape
    C_out = acc_ref.shape[-1]

    d = pl.program_id(1)
    kd = pl.program_id(2)
    num_d = pl.num_programs(1)

    @pl.when(kd == 0)
    def _init():
        acc_ref[...] = jnp.zeros_like(acc_ref)
        pad_ref[...] = jnp.zeros_like(pad_ref)   # borders stay zero for kd = 1, 2

    dz = d + kd - 1                              # source depth of this tap

    @pl.when(jnp.logical_and(dz >= 0, dz < num_d))
    def _accumulate():
        pad_ref[1:H + 1, 1:W + 1, :] = a_ref[0, 0]
        w_kd = w_ref[kd]                         # (3, 3*C_mid, C_out)
        acc = acc_ref[...]
        for kh in range(3):
            # Fold kw into the contraction: K = 3 * C_mid.
            xkh = jnp.concatenate(
                [pad_ref[kh:kh + H, kw:kw + W, :].reshape(H * W, C_mid)
                 for kw in range(3)], axis=-1)   # (H*W, 3*C_mid)
            acc = acc + jnp.dot(xkh, w_kd[kh],
                                preferred_element_type=jnp.float32)
        acc_ref[...] = acc

    @pl.when(kd == pl.num_programs(2) - 1)
    def _store():
        o_ref[...] = acc_ref[...].reshape(1, 1, H, W, C_out).astype(o_ref.dtype)


def _vmem_limit_bytes(block_byte_counts, headroom=4 << 20):
    # double-buffered blocks + generous slack, clamped to a safe range on all gens
    total = 2 * sum(block_byte_counts) + headroom
    return int(min(max(total, 8 << 20), 32 << 20))


# ---------------------------------------------------------------------------
# Wrapper: concat, BN folding, layout plumbing, pallas_calls.
# ---------------------------------------------------------------------------
def dense_layer_forward(prev_features, params, eps=1e-5):
    x = jnp.concatenate(prev_features, axis=1)             # (N, C_in, D, H, W)
    N, C_in, D, H, W = x.shape
    C_mid = params["w1"].shape[0]                          # bn_size * growth_rate
    C_out = params["w2"].shape[0]                          # growth_rate
    M = N * D * H * W
    f32 = jnp.float32

    # ---- fold BN (inference) into scale/bias; fold BN2 scale into conv1 weight
    inv1 = params["gamma1"] / jnp.sqrt(params["var1"] + eps)
    s1 = inv1.reshape(1, C_in)
    b1 = (params["beta1"] - params["mean1"] * inv1).reshape(1, C_in)
    inv2 = params["gamma2"] / jnp.sqrt(params["var2"] + eps)
    b2 = (params["beta2"] - params["mean2"] * inv2).reshape(1, C_mid)
    w1m = params["w1"][:, :, 0, 0, 0].T                    # (C_in, C_mid)
    w1f = w1m * inv2.reshape(1, C_mid)                     # BN2 scale folded in

    # 3x3x3 weights as [kd, kh, (kw, c_mid), c_out]  (kw folded into contraction)
    w2f = jnp.transpose(params["w2"], (2, 3, 4, 1, 0)).reshape(3, 3, 3 * C_mid, C_out)

    # ---- stage 1: fused pointwise+matmul, tiled over M rows --------------------
    # TODO(synk): NCDHW<->NDHWC transposes kept in XLA; carry NDHWC end-to-end in
    # a full DenseNet to avoid the layout churn.
    x2d = jnp.transpose(x, (0, 2, 3, 4, 1)).reshape(M, C_in)
    TM = min(512, ((M + 7) // 8) * 8)
    M_pad = ((M + TM - 1) // TM) * TM
    if M_pad != M:
        x2d = jnp.pad(x2d, ((0, M_pad - M), (0, 0)))

    blk_bytes1 = [TM * C_in * 4, TM * C_mid * 4, C_in * C_mid * 4]
    a2d = pl.pallas_call(
        _stage1_kernel,
        out_shape=jax.ShapeDtypeStruct((M_pad, C_mid), f32),
        grid=(M_pad // TM,),
        in_specs=[pl.BlockSpec((TM, C_in), lambda i: (i, 0)),
                  pl.BlockSpec((1, C_in), lambda i: (0, 0)),
                  pl.BlockSpec((1, C_in), lambda i: (0, 0)),
                  pl.BlockSpec((C_in, C_mid), lambda i: (0, 0)),
                  pl.BlockSpec((1, C_mid), lambda i: (0, 0))],
        out_specs=pl.BlockSpec((TM, C_mid), lambda i: (i, 0)),
        compiler_params=pltpu.CompilerParams(
            dimension_semantics=("parallel",),
            vmem_limit_bytes=_vmem_limit_bytes(blk_bytes1)),
    )(x2d, s1, b1, w1f, b2)

    # ---- stage 2: 3x3x3 conv, (N, D, kd) grid, no pad pass ---------------------
    a5 = a2d[:M].reshape(N, D, H, W, C_mid)                # free reshape

    def a_index(n, d, kd):
        dz = jnp.minimum(jnp.maximum(d + kd - 1, 0), D - 1)  # clamp; masked in kernel
        return (n, dz, 0, 0, 0)

    blk_bytes2 = [H * W * C_mid * 4,                       # activation slice
                  H * W * C_out * 4,                       # output slab
                  3 * 3 * 3 * C_mid * C_out * 4,           # weights (resident)
                  (H + 2) * (W + 2) * C_mid * 4,           # padded slab scratch
                  H * W * C_out * 4]                       # accumulator scratch
    out5 = pl.pallas_call(
        _conv3x3x3_kernel,
        out_shape=jax.ShapeDtypeStruct((N, D, H, W, C_out), f32),
        grid=(N, D, 3),
        in_specs=[pl.BlockSpec((1, 1, H, W, C_mid), a_index),
                  pl.BlockSpec((3, 3, 3 * C_mid, C_out),
                               lambda n, d, kd: (0, 0, 0, 0))],
        out_specs=pl.BlockSpec((1, 1, H, W, C_out),
                               lambda n, d, kd: (n, d, 0, 0, 0)),
        scratch_shapes=[pltpu.VMEM((H * W, C_out), f32),
                        pltpu.VMEM((H + 2, W + 2, C_mid), f32)],
        compiler_params=pltpu.CompilerParams(
            dimension_semantics=("parallel", "parallel", "arbitrary"),
            vmem_limit_bytes=_vmem_limit_bytes(blk_bytes2)),
    )(a5, w2f)

    # drop_rate = 0.0 / eval mode -> identity.
    return jnp.transpose(out5, (0, 4, 1, 2, 3))            # NDHWC -> NCDHW


# ---------------------------------------------------------------------------
# Pure-JAX reference (numerical check)
# ---------------------------------------------------------------------------
def _reference(prev_features, params, eps=1e-5):
    x = jnp.concatenate(prev_features, axis=1)

    def bn(x, g, b, m, v):
        shp = (1, -1, 1, 1, 1)
        return (x - m.reshape(shp)) / jnp.sqrt(v.reshape(shp) + eps) \
            * g.reshape(shp) + b.reshape(shp)

    dn = ("NCDHW", "OIDHW", "NCDHW")
    h = jnp.maximum(bn(x, params["gamma1"], params["beta1"],
                       params["mean1"], params["var1"]), 0.0)
    bot = lax.conv_general_dilated(h, params["w1"], (1, 1, 1), "VALID",
                                   dimension_numbers=dn)
    h2 = jnp.maximum(bn(bot, params["gamma2"], params["beta2"],
                        params["mean2"], params["var2"]), 0.0)
    return lax.conv_general_dilated(h2, params["w2"], (1, 1, 1),
                                    [(1, 1), (1, 1), (1, 1)],
                                    dimension_numbers=dn)


if __name__ == "__main__":
    # Two prev features of 4 and 8 channels (concat -> num_input_features=12),
    # growth_rate=8, bn_size=2  =>  C_mid=16, C_out=8.
    N, D, H, W = 2, 8, 8, 8
    C1, C2 = 4, 8
    C_in = C1 + C2
    growth_rate, bn_size = 8, 2
    C_mid, C_out = bn_size * growth_rate, growth_rate

    key = jax.random.PRNGKey(0)
    ks = jax.random.split(key, 12)

    f1 = jax.random.normal(ks[0], (N, C1, D, H, W), jnp.float32)
    f2 = jax.random.normal(ks[1], (N, C2, D, H, W), jnp.float32)

    params = {
        "gamma1": 1.0 + 0.1 * jax.random.normal(ks[2], (C_in,), jnp.float32),
        "beta1": 0.1 * jax.random.normal(ks[3], (C_in,), jnp.float32),
        "mean1": 0.1 * jax.random.normal(ks[4], (C_in,), jnp.float32),
        "var1": jax.random.uniform(ks[5], (C_in,), jnp.float32, 0.5, 1.5),
        "w1": 0.1 * jax.random.normal(ks[6], (C_mid, C_in, 1, 1, 1), jnp.float32),
        "gamma2": 1.0 + 0.1 * jax.random.normal(ks[7], (C_mid,), jnp.float32),
        "beta2": 0.1 * jax.random.normal(ks[8], (C_mid,), jnp.float32),
        "mean2": 0.1 * jax.random.normal(ks[9], (C_mid,), jnp.float32),
        "var2": jax.random.uniform(ks[10], (C_mid,), jnp.float32, 0.5, 1.5),
        "w2": 0.1 * jax.random.normal(ks[11], (C_out, C_mid, 3, 3, 3), jnp.float32),
    }

    out = jax.block_until_ready(dense_layer_forward([f1, f2], params))
    ref = jax.block_until_ready(_reference([f1, f2], params))

    assert out.shape == (N, C_out, D, H, W), out.shape
    if not jnp.allclose(out, ref, atol=1e-2, rtol=1e-2):
        raise RuntimeError("Pallas output does not match reference")
    print("KERNEL_OK")
</pallas_src>

<mosaic_0001>
module attributes {stable_mosaic.version = 11 : i64} {
  func.func @_stage1_kernel(%arg0: i32, %arg1: memref<512x12xf32, #tpu.memory_space<vmem>>, %arg2: memref<1x12xf32, #tpu.memory_space<vmem>>, %arg3: memref<1x12xf32, #tpu.memory_space<vmem>>, %arg4: memref<12x16xf32, #tpu.memory_space<vmem>>, %arg5: memref<1x16xf32, #tpu.memory_space<vmem>>, %arg6: memref<512x16xf32, #tpu.memory_space<vmem>>) attributes {dimension_semantics = [#tpu.dimension_semantics<parallel>], iteration_bounds = array<i64: 2>, scalar_prefetch = 0 : i64, scratch_operands = 0 : i64, tpu.core_type = #tpu.core_type<tc>, window_params = [{transform_indices = @transform_0, window_bounds = array<i64: 512, 12>}, {pipeline_mode = #tpu.pipeline_mode<synchronous>, transform_indices = @transform_1, window_bounds = array<i64: 1, 12>}, {pipeline_mode = #tpu.pipeline_mode<synchronous>, transform_indices = @transform_2, window_bounds = array<i64: 1, 12>}, {pipeline_mode = #tpu.pipeline_mode<synchronous>, transform_indices = @transform_3, window_bounds = array<i64: 12, 16>}, {pipeline_mode = #tpu.pipeline_mode<synchronous>, transform_indices = @transform_4, window_bounds = array<i64: 1, 16>}, {transform_indices = @transform_5, window_bounds = array<i64: 512, 16>}]} {
    %c0 = arith.constant 0 : index
    %c0_0 = arith.constant 0 : index
    %0 = vector.load %arg1[%c0, %c0_0] : memref<512x12xf32, #tpu.memory_space<vmem>>, vector<512x12xf32>
    %c0_1 = arith.constant 0 : index
    %c0_2 = arith.constant 0 : index
    %1 = vector.load %arg2[%c0_1, %c0_2] : memref<1x12xf32, #tpu.memory_space<vmem>>, vector<1x12xf32>
    %2 = vector.broadcast %1 : vector<1x12xf32> to vector<512x12xf32>
    %3 = arith.mulf %0, %2 : vector<512x12xf32>
    %c0_3 = arith.constant 0 : index
    %c0_4 = arith.constant 0 : index
    %4 = vector.load %arg3[%c0_3, %c0_4] : memref<1x12xf32, #tpu.memory_space<vmem>>, vector<1x12xf32>
    %5 = vector.broadcast %4 : vector<1x12xf32> to vector<512x12xf32>
    %6 = arith.addf %3, %5 : vector<512x12xf32>
    %cst = arith.constant 0.000000e+00 : f32
    %7 = vector.broadcast %cst : f32 to vector<512x12xf32>
    %8 = arith.maximumf %6, %7 : vector<512x12xf32>
    %c0_5 = arith.constant 0 : index
    %c0_6 = arith.constant 0 : index
    %9 = vector.load %arg4[%c0_5, %c0_6] : memref<12x16xf32, #tpu.memory_space<vmem>>, vector<12x16xf32>
    %cst_7 = arith.constant dense<0.000000e+00> : vector<512x16xf32>
    %10 = tpu.matmul %8, %9, %cst_7 {dimension_numbers = #tpu.dot_dimension_numbers<[1], [0], [0], [1], [0, 0, 1, 1], [], []>} : vector<512x12xf32>, vector<12x16xf32>, vector<512x16xf32> -> vector<512x16xf32>
    %c0_8 = arith.constant 0 : index
    %c0_9 = arith.constant 0 : index
    %11 = vector.load %arg5[%c0_8, %c0_9] : memref<1x16xf32, #tpu.memory_space<vmem>>, vector<1x16xf32>
    %12 = vector.broadcast %11 : vector<1x16xf32> to vector<512x16xf32>
    %13 = arith.addf %10, %12 : vector<512x16xf32>
    %cst_10 = arith.constant 0.000000e+00 : f32
    %14 = vector.broadcast %cst_10 : f32 to vector<512x16xf32>
    %15 = arith.maximumf %13, %14 : vector<512x16xf32>
    %c0_11 = arith.constant 0 : index
    %c0_12 = arith.constant 0 : index
    %16 = vector.load %arg6[%c0_11, %c0_12] : memref<512x16xf32, #tpu.memory_space<vmem>>, vector<512x16xf32>
    tpu.vector_store %arg6[%c0_11, %c0_12], %15 {strides = array<i32>} : memref<512x16xf32, #tpu.memory_space<vmem>>, vector<512x16xf32>,
    return
  }
  func.func @transform_0(%arg0: i32) -> (i32, i32) {
    %c0_i32 = arith.constant 0 : i32
    %c0_i32_0 = arith.constant 0 : i32
    return %arg0, %c0_i32 : i32, i32
  }
  func.func @transform_1(%arg0: i32) -> (i32, i32) {
    %c0_i32 = arith.constant 0 : i32
    %c0_i32_0 = arith.constant 0 : i32
    %c0_i32_1 = arith.constant 0 : i32
    return %c0_i32, %c0_i32_0 : i32, i32
  }
  func.func @transform_2(%arg0: i32) -> (i32, i32) {
    %c0_i32 = arith.constant 0 : i32
    %c0_i32_0 = arith.constant 0 : i32
    %c0_i32_1 = arith.constant 0 : i32
    return %c0_i32, %c0_i32_0 : i32, i32
  }
  func.func @transform_3(%arg0: i32) -> (i32, i32) {
    %c0_i32 = arith.constant 0 : i32
    %c0_i32_0 = arith.constant 0 : i32
    %c0_i32_1 = arith.constant 0 : i32
    return %c0_i32, %c0_i32_0 : i32, i32
  }
  func.func @transform_4(%arg0: i32) -> (i32, i32) {
    %c0_i32 = arith.constant 0 : i32
    %c0_i32_0 = arith.constant 0 : i32
    %c0_i32_1 = arith.constant 0 : i32
    return %c0_i32, %c0_i32_0 : i32, i32
  }
  func.func @transform_5(%arg0: i32) -> (i32, i32) {
    %c0_i32 = arith.constant 0 : i32
    %c0_i32_0 = arith.constant 0 : i32
    return %arg0, %c0_i32 : i32, i32
  }
}

</mosaic_0001>

<bundles_post_ra>
// kernel: tpu_custom_call.1
= control target key start
LH: loop header
LB: loop body
LE: loop exit
PB: predicated region body
PF: predicated region fallthrough
CT: control target
= control target key end

     0   :  { %s1569_s18 = smov 0   ;;  %s2066_s0 = inlined_call_operand.vmem [shape: f32[1024,12], index: 0, kind: input, shape index: {}]   ;;  %s2067_s1 = inlined_call_operand.vmem [shape: f32[1,12], index: 1, kind: input, shape index: {}]   ;;  %s2068_s2 = inlined_call_operand.vmem [shape: f32[1,12], index: 2, kind: input, shape index: {}]   ;;  %s2069_s3 = inlined_call_operand.vmem [shape: f32[12,16], index: 3, kind: input, shape index: {}]   ;;  %s2070_s4 = inlined_call_operand.vmem [shape: f32[1,16], index: 4, kind: input, shape index: {}]   ;;  %s2071_s5 = inlined_call_operand.vmem [shape: f32[1024,16], index: 5, kind: output, shape index: {}]  }
   0x1 LB: > { %s1274_s19 = sadd.s32 4294967295, %s1537_s18   ;;  %p1278_p0 = scmp.ge.s32.totalorder %s1537_s18, 1  ;;  %s1537_s18 = sphi %s1569_s18, %s15_s18  }
   0x2   : > { %p188_p1 = scmp.lt.s32.totalorder %s1537_s18, 3 }
   0x4   : > { %p189_p2 = pnand %p1278_p0, %p188_p1 }
   0x5   : > { %s1279_s24 = sshll.u32 (!%p189_p2), %s1274_s19, 6 }
   0x6   : > { %192 = sbr.rel (%p189_p2) target bundleno = 283 (0x11b), region = 40  ;;  %p217_p3 = scmp.lt.s32.totalorder (!%p189_p2), %s1279_s24, 127 }
   0xb   : > { %v499_v0 = vld [vmem:[%s2069_s3 + $0x8] sm:$0xf]  ;;  %vm700_vm0 = vcmask 1043456   ;;  %v498_v1 = vld [vmem:[%s2069_s3] sm:$0xff]  ;;  %s2073_s24 = smov (!%p217_p3, %s1279_s24), 127  ;;  %vm507_vm1 = vcmask 97280  }
   0xc   : > { %1419 = vmatprep.subr.msk.mxu0 %vm700_vm0, %v499_v0  ;;  %1519 = vmatprep.subr.msk.mxu1 %vm700_vm0, %v499_v0  ;;  %s1280_s25 = sshll.u32 %s2073_s24, 3  ;;  %v1589_v2 = vld [vmem:[%s2067_s1] ss:$0 sm:$0xff]  ;;  %vm1153_vm2 = vcmask 130048  }
   0xd   : > { %1420 = vmatpush3.msk.msra.mxu0 %vm700_vm0, %v499_v0  ;;  %1521 = vmatpush3.msk.msra.mxu1 %vm700_vm0, %v499_v0  ;;  %s1596_s30 = scalar_lea.vmem %s2066_s0, %s1280_s25  ;;  %v1601_v3 = vld [vmem:[%s2068_s2] ss:$0 sm:$0xff]  ;;  %s1871_s12 = scalar_lea.vmem %s2071_s5, %s1280_s25 }
   0xe   : > { %1421 = vmatprep.subr.mxu0 %v498_v1  ;;  %1520 = vmatprep.subr.mxu1 %v498_v1  ;;  %v228_v4 = vld [vmem:[%s1596_s30] sm:$0xff]  ;;  %v229_v6 = vld [vmem:[%s1596_s30 + $0x8] sm:$0xff]  ;;  %v230_v11 = vld [vmem:[%s1596_s30 + $0x10] sm:$0xff] }
   0xf   : > { %1422 = vmatpush3.msra.mxu0 %v498_v1  ;;  %1522 = vmatpush3.msra.mxu1 %v498_v1  ;;  %v260_v5 = vld [vmem:[%s1596_s30 + $0x100] sm:$0xff]  ;;  %v299_v7 = vmul.f32 %v1589_v2, %v228_v4  ;;  %v300_v9 = vmul.f32 %v1589_v2, %v229_v6  ;;  %v261_v10 = vld [vmem:[%s1596_s30 + $0x108] sm:$0xff]  ;;  %v262_v12 = vld [vmem:[%s1596_s30 + $0x110] sm:$0xff]  ;;  %v301_v14 = vmul.f32 %v1589_v2, %v230_v11 }
  0x10   : > { %v331_v8 = vmul.f32 %v1589_v2, %v260_v5  ;;  %v332_v13 = vmul.f32 %v1589_v2, %v261_v10  ;;  %v333_v15 = vmul.f32 %v1589_v2, %v262_v12  ;;  %v231_v16 = vld [vmem:[%s1596_s30 + $0x18] sm:$0xff]  ;;  %v232_v26 = vld [vmem:[%s1596_s30 + $0x20] sm:$0xff]  ;;  %v233_v28 = vld [vmem:[%s1596_s30 + $0x28] sm:$0xff] }
  0x11   : > { %v263_v17 = vld [vmem:[%s1596_s30 + $0x118] sm:$0xff]  ;;  %v370_v18 = vadd.f32 %v1601_v3, %v299_v7  ;;  %v371_v20 = vadd.f32 %v1601_v3, %v300_v9  ;;  %v302_v21 = vmul.f32 %v1589_v2, %v231_v16  ;;  %v372_v23 = vadd.f32 %v1601_v3, %v301_v14  ;;  %v264_v27 = vld [vmem:[%s1596_s30 + $0x120] sm:$0xff]  ;;  %v265_v33 = vld [vmem:[%s1596_s30 + $0x128] sm:$0xff] }
  0x12   : > { %v402_v19 = vadd.f32 %v1601_v3, %v331_v8  ;;  %v403_v22 = vadd.f32 %v1601_v3, %v332_v13  ;;  %v404_v24 = vadd.f32 %v1601_v3, %v333_v15  ;;  %v334_v25 = vmul.f32 %v1589_v2, %v263_v17  ;;  %v234_v34 = vld [vmem:[%s1596_s30 + $0x30] sm:$0xff]  ;;  %v235_v44 = vld [vmem:[%s1596_s30 + $0x38] sm:$0xff]  ;;  %v236_v57 = vld [vmem:[%s1596_s30 + $0x40] sm:$0xff] }
  0x13   : > { %v434_v29 = vmax.f32 %v370_v18, 0.0  ;;  %v435_v31 = vmax.f32 %v371_v20, 0.0  ;;  %v373_v32 = vadd.f32 %v1601_v3, %v302_v21  ;;  %v266_v35 = vld [vmem:[%s1596_s30 + $0x130] sm:$0xff]  ;;  %v436_v37 = vmax.f32 %v372_v23, 0.0  ;;  %v267_v49 = vld [vmem:[%s1596_s30 + $0x138] sm:$0xff]  ;;  %v268_v58 = vld [vmem:[%s1596_s30 + $0x140] sm:$0xff] }
  0x14   : > { %v466_v30 = vmax.f32 %v402_v19, 0.0  ;;  %v467_v36 = vmax.f32 %v403_v22, 0.0  ;;  %v468_v38 = vmax.f32 %v404_v24, 0.0  ;;  %v405_v39 = vadd.f32 %v1601_v3, %v334_v25  ;;  %v237_v62 = vld [vmem:[%s1596_s30 + $0x48] sm:$0xff]  ;;  %v238_v0 = vld [vmem:[%s1596_s30 + $0x50] sm:$0xff]  ;;  %v239_v15 = vld [vmem:[%s1596_s30 + $0x58] sm:$0xff] }
  0x15   : > { %1423 = vmatprep.mubr.msk.f32.mxu0 %vm507_vm1, %v434_v29  ;;  %v437_v40 = vmax.f32 %v373_v32, 0.0  ;;  %v303_v41 = vmul.f32 %v1589_v2, %v232_v26  ;;  %v335_v42 = vmul.f32 %v1589_v2, %v264_v27  ;;  %v304_v43 = vmul.f32 %v1589_v2, %v233_v28  ;;  %v269_v63 = vld [vmem:[%s1596_s30 + $0x148] sm:$0xff]  ;;  %v270_v7 = vld [vmem:[%s1596_s30 + $0x150] sm:$0xff]  ;;  %v271_v20 = vld [vmem:[%s1596_s30 + $0x158] sm:$0xff] }
  0x16   : > { %1471 = vmatprep.mubr.msk.f32.mxu1 %vm507_vm1, %v466_v30  ;;  %1424 = vmatmul.mubr.msk.f32.vlgmr.msra.gmra.mxu0 %vm507_vm1, %v435_v31  ;;  %v469_v45 = vmax.f32 %v405_v39, 0.0  ;;  %v336_v46 = vmul.f32 %v1589_v2, %v265_v33  ;;  %v305_v47 = vmul.f32 %v1589_v2, %v234_v34  ;;  %v337_v48 = vmul.f32 %v1589_v2, %v266_v35  ;;  %v240_v25 = vld [vmem:[%s1596_s30 + $0x60] sm:$0xff]  ;;  %v241_v31 = vld [vmem:[%s1596_s30 + $0x68] sm:$0xff]  ;;  %v242_v35 = vld [vmem:[%s1596_s30 + $0x70] sm:$0xff] }
  0x17   : > { %1472 = vmatmul.mubr.msk.f32.vlgmr.msra.gmra.mxu1 %vm507_vm1, %v467_v36  ;;  %1426 = vmatprep.mubr.msk.f32.mxu0 %vm507_vm1, %v436_v37  ;;  %v374_v50 = vadd.f32 %v1601_v3, %v303_v41  ;;  %v406_v51 = vadd.f32 %v1601_v3, %v335_v42  ;;  %v375_v52 = vadd.f32 %v1601_v3, %v304_v43  ;;  %v272_v26 = vld [vmem:[%s1596_s30 + $0x160] sm:$0xff]  ;;  %v273_v32 = vld [vmem:[%s1596_s30 + $0x168] sm:$0xff] }
  0x18   : > { %1474 = vmatprep.mubr.msk.f32.mxu1 %vm507_vm1, %v468_v38  ;;  %v407_v53 = vadd.f32 %v1601_v3, %v336_v46  ;;  %v376_v54 = vadd.f32 %v1601_v3, %v305_v47  ;;  %v408_v55 = vadd.f32 %v1601_v3, %v337_v48  ;;  %v306_v56 = vmul.f32 %v1589_v2, %v235_v44 }
  0x19   : > { %v438_v59 = vmax.f32 %v374_v50, 0.0  ;;  %v470_v60 = vmax.f32 %v406_v51, 0.0  ;;  %v338_v61 = vmul.f32 %v1589_v2, %v267_v49  ;;  %v439_v1 = vmax.f32 %v375_v52, 0.0  ;;  %v275_v50 = vld [vmem:[%s1596_s30 + $0x178] sm:$0xff]  ;;  %v244_v52 = vld [vmem:[%s1596_s30 + $0x80] sm:$0xff] }
  0x1a   : > { %1427 = vmatmul.mubr.msk.f32.gmra.mxu0 %vm507_vm1, %v437_v40  ;;  %v471_v4 = vmax.f32 %v407_v53, 0.0  ;;  %v440_v5 = vmax.f32 %v376_v54, 0.0  ;;  %v377_v6 = vadd.f32 %v1601_v3, %v306_v56  ;;  %v472_v8 = vmax.f32 %v408_v55, 0.0  ;;  %v274_v40 = vld [vmem:[%s1596_s30 + $0x170] sm:$0xff]  ;;  %v276_v53 = vld [vmem:[%s1596_s30 + $0x180] sm:$0xff] }
  0x1b   : > { %1475 = vmatmul.mubr.msk.f32.gmra.mxu1 %vm507_vm1, %v469_v45  ;;  %1429 = vmatprep.mubr.msk.f32.mxu0 %vm507_vm1, %v438_v59  ;;  %v409_v9 = vadd.f32 %v1601_v3, %v338_v61  ;;  %v307_v10 = vmul.f32 %v1589_v2, %v236_v57  ;;  %v339_v11 = vmul.f32 %v1589_v2, %v268_v58  ;;  %v243_v45 = vld [vmem:[%s1596_s30 + $0x78] sm:$0xff] }
  0x1c   : > { %1477 = vmatprep.mubr.msk.f32.mxu1 %vm507_vm1, %v470_v60  ;;  %v308_v12 = vmul.f32 %v1589_v2, %v237_v62  ;;  %v340_v13 = vmul.f32 %v1589_v2, %v269_v63  ;;  %v309_v14 = vmul.f32 %v1589_v2, %v238_v0  ;;  %v441_v16 = vmax.f32 %v377_v6, 0.0  ;;  %v245_v62 = vld [vmem:[%s1596_s30 + $0x88] sm:$0xff]  ;;  %v246_v6 = vld [vmem:[%s1596_s30 + $0x90] sm:$0xff] }
  0x1d   : > { %v378_v17 = vadd.f32 %v1601_v3, %v307_v10  ;;  %v410_v18 = vadd.f32 %v1601_v3, %v339_v11  ;;  %v341_v19 = vmul.f32 %v1589_v2, %v270_v7  ;;  %v473_v21 = vmax.f32 %v409_v9, 0.0  ;;  %v278_v7 = vld [vmem:[%s1596_s30 + $0x190] sm:$0xff] }
  0x1e   : > { %1430 = vmatmul.mubr.msk.f32.gmra.mxu0 %vm507_vm1, %v439_v1  ;;  %v379_v22 = vadd.f32 %v1601_v3, %v308_v12  ;;  %v411_v23 = vadd.f32 %v1601_v3, %v340_v13  ;;  %v380_v24 = vadd.f32 %v1601_v3, %v309_v14  ;;  %v310_v30 = vmul.f32 %v1589_v2, %v239_v15 }
  0x1f   : > { %1478 = vmatmul.mubr.msk.f32.gmra.mxu1 %vm507_vm1, %v471_v4  ;;  %1432 = vmatprep.mubr.msk.f32.mxu0 %vm507_vm1, %v440_v5  ;;  %v442_v27 = vmax.f32 %v378_v17, 0.0  ;;  %v474_v28 = vmax.f32 %v410_v18, 0.0  ;;  %v412_v29 = vadd.f32 %v1601_v3, %v341_v19  ;;  %v342_v34 = vmul.f32 %v1589_v2, %v271_v20  ;;  %v277_v5 = vld [vmem:[%s1596_s30 + $0x188] sm:$0xff]  ;;  %v279_v17 = vld [vmem:[%s1596_s30 + $0x198] sm:$0xff] }
  0x20   : > { %1480 = vmatprep.mubr.msk.f32.mxu1 %vm507_vm1, %v472_v8  ;;  %v443_v33 = vmax.f32 %v379_v22, 0.0  ;;  %v475_v36 = vmax.f32 %v411_v23, 0.0  ;;  %v381_v37 = vadd.f32 %v1601_v3, %v310_v30  ;;  %v311_v38 = vmul.f32 %v1589_v2, %v240_v25  ;;  %v248_v22 = vld [vmem:[%s1596_s30 + $0xa0] sm:$0xff] }
  0x21   : > { %v343_v39 = vmul.f32 %v1589_v2, %v272_v26  ;;  %v444_v41 = vmax.f32 %v380_v24, 0.0  ;;  %v413_v42 = vadd.f32 %v1601_v3, %v342_v34  ;;  %v312_v43 = vmul.f32 %v1589_v2, %v241_v31  ;;  %v280_v23 = vld [vmem:[%s1596_s30 + $0x1a0] sm:$0xff] }
  0x22   : > { %1433 = vmatmul.mubr.msk.f32.gmra.mxu0 %vm507_vm1, %v441_v16  ;;  %v344_v44 = vmul.f32 %v1589_v2, %v273_v32  ;;  %v476_v46 = vmax.f32 %v412_v29, 0.0  ;;  %v382_v47 = vadd.f32 %v1601_v3, %v311_v38  ;;  %v313_v49 = vmul.f32 %v1589_v2, %v242_v35  ;;  %v247_v16 = vld [vmem:[%s1596_s30 + $0x98] sm:$0xff]  ;;  %v249_v32 = vld [vmem:[%s1596_s30 + $0xa8] sm:$0xff]  ;;  %v250_v38 = vld [vmem:[%s1596_s30 + $0xb0] sm:$0xff] }
  0x23   : > { %1481 = vmatmul.mubr.msk.f32.gmra.mxu1 %vm507_vm1, %v473_v21  ;;  %1435 = vmatprep.mubr.msk.f32.mxu0 %vm507_vm1, %v442_v27  ;;  %v414_v48 = vadd.f32 %v1601_v3, %v343_v39  ;;  %v345_v51 = vmul.f32 %v1589_v2, %v274_v40  ;;  %v445_v54 = vmax.f32 %v381_v37, 0.0  ;;  %v383_v55 = vadd.f32 %v1601_v3, %v312_v43  ;;  %v281_v37 = vld [vmem:[%s1596_s30 + $0x1a8] sm:$0xff]  ;;  %v282_v39 = vld [vmem:[%s1596_s30 + $0x1b0] sm:$0xff] }
  0x24   : > { %1483 = vmatprep.mubr.msk.f32.mxu1 %vm507_vm1, %v474_v28  ;;  %v415_v56 = vadd.f32 %v1601_v3, %v344_v44  ;;  %v314_v57 = vmul.f32 %v1589_v2, %v243_v45  ;;  %v477_v58 = vmax.f32 %v413_v42, 0.0  ;;  %v446_v59 = vmax.f32 %v382_v47, 0.0 }
  0x25   : > { %v384_v60 = vadd.f32 %v1601_v3, %v313_v49  ;;  %v346_v61 = vmul.f32 %v1589_v2, %v275_v50  ;;  %v478_v63 = vmax.f32 %v414_v48, 0.0  ;;  %v416_v0 = vadd.f32 %v1601_v3, %v345_v51  ;;  %v251_v48 = vld [vmem:[%s1596_s30 + $0xb8] sm:$0xff] }
  0x26   : > { %1436 = vmatmul.mubr.msk.f32.gmra.mxu0 %vm507_vm1, %v443_v33  ;;  %v315_v1 = vmul.f32 %v1589_v2, %v244_v52  ;;  %v347_v4 = vmul.f32 %v1589_v2, %v276_v53  ;;  %v447_v8 = vmax.f32 %v383_v55, 0.0  ;;  %v479_v9 = vmax.f32 %v415_v56, 0.0  ;;  %v283_v53 = vld [vmem:[%s1596_s30 + $0x1b8] sm:$0xff]  ;;  %v284_v55 = vld [vmem:[%s1596_s30 + $0x1c0] sm:$0xff] }
  0x27   : > { %1484 = vmatmul.mubr.msk.f32.gmra.mxu1 %vm507_vm1, %v475_v36  ;;  %1438 = vmatprep.mubr.msk.f32.mxu0 %vm507_vm1, %v444_v41  ;;  %v385_v10 = vadd.f32 %v1601_v3, %v314_v57  ;;  %v316_v11 = vmul.f32 %v1589_v2, %v245_v62  ;;  %v448_v12 = vmax.f32 %v384_v60, 0.0  ;;  %v417_v13 = vadd.f32 %v1601_v3, %v346_v61 }
  0x28   : > { %1486 = vmatprep.mubr.msk.f32.mxu1 %vm507_vm1, %v476_v46  ;;  %v386_v14 = vadd.f32 %v1601_v3, %v315_v1  ;;  %v348_v15 = vmul.f32 %v1589_v2, %v277_v5  ;;  %v480_v18 = vmax.f32 %v416_v0, 0.0  ;;  %v418_v19 = vadd.f32 %v1601_v3, %v347_v4  ;;  %v253_v0 = vld [vmem:[%s1596_s30 + $0xc8] sm:$0xff] }
  0x29   : > { %v317_v20 = vmul.f32 %v1589_v2, %v246_v6  ;;  %v349_v21 = vmul.f32 %v1589_v2, %v278_v7  ;;  %v449_v24 = vmax.f32 %v385_v10, 0.0  ;;  %v387_v25 = vadd.f32 %v1601_v3, %v316_v11  ;;  %v285_v1 = vld [vmem:[%s1596_s30 + $0x1c8] sm:$0xff] }
  0x2a   : > { %1439 = vmatmul.mubr.msk.f32.gmra.mxu0 %vm507_vm1, %v445_v54  ;;  %v318_v26 = vmul.f32 %v1589_v2, %v247_v16  ;;  %v350_v27 = vmul.f32 %v1589_v2, %v279_v17  ;;  %v481_v28 = vmax.f32 %v417_v13, 0.0  ;;  %v450_v29 = vmax.f32 %v386_v14, 0.0  ;;  %v252_v54 = vld [vmem:[%s1596_s30 + $0xc0] sm:$0xff] }
  0x2b   : > { %1487 = vmatmul.mubr.msk.f32.gmra.mxu1 %vm507_vm1, %v477_v58  ;;  %1441 = vmatprep.mubr.msk.f32.mxu0 %vm507_vm1, %v446_v59  ;;  %v419_v30 = vadd.f32 %v1601_v3, %v348_v15  ;;  %v319_v31 = vmul.f32 %v1589_v2, %v248_v22  ;;  %v482_v33 = vmax.f32 %v418_v19, 0.0  ;;  %v388_v34 = vadd.f32 %v1601_v3, %v317_v20 }
  0x2c   : > { %1489 = vmatprep.mubr.msk.f32.mxu1 %vm507_vm1, %v478_v63  ;;  %v420_v35 = vadd.f32 %v1601_v3, %v349_v21  ;;  %v351_v36 = vmul.f32 %v1589_v2, %v280_v23  ;;  %v451_v40 = vmax.f32 %v387_v25, 0.0  ;;  %v389_v41 = vadd.f32 %v1601_v3, %v318_v26  ;;  %v287_v23 = vld [vmem:[%s1596_s30 + $0x1d8] sm:$0xff]  ;;  %v288_v25 = vld [vmem:[%s1596_s30 + $0x1e0] sm:$0xff] }
  0x2d   : > { %v421_v42 = vadd.f32 %v1601_v3, %v350_v27  ;;  %v320_v43 = vmul.f32 %v1589_v2, %v249_v32  ;;  %v483_v44 = vmax.f32 %v419_v30, 0.0  ;;  %v390_v45 = vadd.f32 %v1601_v3, %v319_v31 }
  0x2e   : > { %1442 = vmatmul.mubr.msk.f32.gmra.mxu0 %vm507_vm1, %v447_v8  ;;  %v352_v46 = vmul.f32 %v1589_v2, %v281_v37  ;;  %v321_v47 = vmul.f32 %v1589_v2, %v250_v38  ;;  %v452_v49 = vmax.f32 %v388_v34, 0.0  ;;  %v484_v50 = vmax.f32 %v420_v35, 0.0  ;;  %v254_v8 = vld [vmem:[%s1596_s30 + $0xd0] sm:$0xff]  ;;  %v257_v34 = vld [vmem:[%s1596_s30 + $0xe8] sm:$0xff] }
  0x2f   : > { %1490 = vmatmul.mubr.msk.f32.gmra.mxu1 %vm507_vm1, %v479_v9  ;;  %1444 = vmatprep.mubr.msk.f32.mxu0 %vm507_vm1, %v448_v12  ;;  %v422_v51 = vadd.f32 %v1601_v3, %v351_v36  ;;  %v353_v52 = vmul.f32 %v1589_v2, %v282_v39  ;;  %v453_v56 = vmax.f32 %v389_v41, 0.0  ;;  %v485_v57 = vmax.f32 %v421_v42, 0.0  ;;  %v286_v9 = vld [vmem:[%s1596_s30 + $0x1d0] sm:$0xff]  ;;  %v289_v39 = vld [vmem:[%s1596_s30 + $0x1e8] sm:$0xff] }
  0x30   : > { %1492 = vmatprep.mubr.msk.f32.mxu1 %vm507_vm1, %v480_v18  ;;  %v391_v58 = vadd.f32 %v1601_v3, %v320_v43  ;;  %v322_v59 = vmul.f32 %v1589_v2, %v251_v48  ;;  %v454_v60 = vmax.f32 %v390_v45, 0.0  ;;  %v423_v61 = vadd.f32 %v1601_v3, %v352_v46  ;;  %v255_v18 = vld [vmem:[%s1596_s30 + $0xd8] sm:$0xff]  ;;  %v290_v41 = vld [vmem:[%s1596_s30 + $0x1f0] sm:$0xff] }
  0x31   : > { %v392_v62 = vadd.f32 %v1601_v3, %v321_v47  ;;  %v354_v63 = vmul.f32 %v1589_v2, %v283_v53  ;;  %v486_v4 = vmax.f32 %v422_v51, 0.0  ;;  %v424_v5 = vadd.f32 %v1601_v3, %v353_v52 }
  0x32   : > { %1445 = vmatmul.mubr.msk.f32.gmra.mxu0 %vm507_vm1, %v449_v24  ;;  %v323_v6 = vmul.f32 %v1589_v2, %v252_v54  ;;  %v355_v7 = vmul.f32 %v1589_v2, %v284_v55  ;;  %v455_v10 = vmax.f32 %v391_v58, 0.0  ;;  %v393_v11 = vadd.f32 %v1601_v3, %v322_v59  ;;  %v256_v24 = vld [vmem:[%s1596_s30 + $0xe0] sm:$0xff]  ;;  %v259_v54 = vld [vmem:[%s1596_s30 + $0xf8] sm:$0xff] }
  0x33   : > { %1493 = vmatmul.mubr.msk.f32.gmra.mxu1 %vm507_vm1, %v481_v28  ;;  %1447 = vmatprep.mubr.msk.f32.mxu0 %vm507_vm1, %v450_v29  ;;  %v324_v12 = vmul.f32 %v1589_v2, %v253_v0  ;;  %v356_v13 = vmul.f32 %v1589_v2, %v285_v1  ;;  %v487_v14 = vmax.f32 %v423_v61, 0.0  ;;  %v456_v15 = vmax.f32 %v392_v62, 0.0  ;;  %v291_v55 = vld [vmem:[%s1596_s30 + $0x1f8] sm:$0xff] }
  0x34   : > { %1495 = vmatprep.mubr.msk.f32.mxu1 %vm507_vm1, %v482_v33  ;;  %v425_v16 = vadd.f32 %v1601_v3, %v354_v63  ;;  %v325_v17 = vmul.f32 %v1589_v2, %v254_v8  ;;  %v488_v19 = vmax.f32 %v424_v5, 0.0  ;;  %v394_v20 = vadd.f32 %v1601_v3, %v323_v6 }
  0x35   : > { %v426_v21 = vadd.f32 %v1601_v3, %v355_v7  ;;  %v357_v22 = vmul.f32 %v1589_v2, %v286_v9  ;;  %v457_v26 = vmax.f32 %v393_v11, 0.0  ;;  %v395_v27 = vadd.f32 %v1601_v3, %v324_v12 }
  0x36   : > { %1448 = vmatmul.mubr.msk.f32.gmra.mxu0 %vm507_vm1, %v451_v40  ;;  %v427_v28 = vadd.f32 %v1601_v3, %v356_v13  ;;  %v326_v29 = vmul.f32 %v1589_v2, %v255_v18  ;;  %v489_v30 = vmax.f32 %v425_v16, 0.0  ;;  %v396_v31 = vadd.f32 %v1601_v3, %v325_v17  ;;  %v258_v40 = vld [vmem:[%s1596_s30 + $0xf0] sm:$0xff] }
  0x37   : > { %1496 = vmatmul.mubr.msk.f32.gmra.mxu1 %vm507_vm1, %v483_v44  ;;  %1450 = vmatprep.mubr.msk.f32.mxu0 %vm507_vm1, %v452_v49  ;;  %v358_v32 = vmul.f32 %v1589_v2, %v287_v23  ;;  %v327_v33 = vmul.f32 %v1589_v2, %v256_v24  ;;  %v458_v35 = vmax.f32 %v394_v20, 0.0  ;;  %v490_v36 = vmax.f32 %v426_v21, 0.0 }
  0x38   : > { %1498 = vmatprep.mubr.msk.f32.mxu1 %vm507_vm1, %v484_v50  ;;  %v428_v37 = vadd.f32 %v1601_v3, %v357_v22  ;;  %v359_v38 = vmul.f32 %v1589_v2, %v288_v25  ;;  %v459_v42 = vmax.f32 %v395_v27, 0.0  ;;  %v491_v43 = vmax.f32 %v427_v28, 0.0 }
  0x39   : > { %v397_v44 = vadd.f32 %v1601_v3, %v326_v29  ;;  %v328_v45 = vmul.f32 %v1589_v2, %v257_v34  ;;  %v460_v46 = vmax.f32 %v396_v31, 0.0  ;;  %v429_v47 = vadd.f32 %v1601_v3, %v358_v32 }
  0x3a   : > { %1451 = vmatmul.mubr.msk.f32.gmra.mxu0 %vm507_vm1, %v453_v56  ;;  %v398_v48 = vadd.f32 %v1601_v3, %v327_v33  ;;  %v360_v49 = vmul.f32 %v1589_v2, %v289_v39  ;;  %v492_v50 = vmax.f32 %v428_v37, 0.0  ;;  %v430_v51 = vadd.f32 %v1601_v3, %v359_v38 }
  0x3b   : > { %1499 = vmatmul.mubr.msk.f32.gmra.mxu1 %vm507_vm1, %v485_v57  ;;  %1453 = vmatprep.mubr.msk.f32.mxu0 %vm507_vm1, %v454_v60  ;;  %v329_v52 = vmul.f32 %v1589_v2, %v258_v40  ;;  %v361_v53 = vmul.f32 %v1589_v2, %v290_v41  ;;  %v461_v56 = vmax.f32 %v397_v44, 0.0  ;;  %v399_v57 = vadd.f32 %v1601_v3, %v328_v45 }
  0x3c   : > { %1501 = vmatprep.mubr.msk.f32.mxu1 %vm507_vm1, %v486_v4  ;;  %v493_v58 = vmax.f32 %v429_v47, 0.0  ;;  %v431_v59 = vadd.f32 %v1601_v3, %v360_v49  ;;  %v330_v60 = vmul.f32 %v1589_v2, %v259_v54  ;;  %v362_v61 = vmul.f32 %v1589_v2, %v291_v55 }
  0x3d   : > { %v462_v62 = vmax.f32 %v398_v48, 0.0  ;;  %v494_v63 = vmax.f32 %v430_v51, 0.0  ;;  %v400_v0 = vadd.f32 %v1601_v3, %v329_v52  ;;  %v432_v1 = vadd.f32 %v1601_v3, %v361_v53 }
  0x3e   : > { %1454 = vmatmul.mubr.msk.f32.gmra.mxu0 %vm507_vm1, %v455_v10  ;;  %v463_v4 = vmax.f32 %v399_v57, 0.0  ;;  %v495_v5 = vmax.f32 %v431_v59, 0.0  ;;  %v401_v6 = vadd.f32 %v1601_v3, %v330_v60  ;;  %v433_v2 = vadd.f32 %v1601_v3, %v362_v61  ;;  %v1862_v3 = vld [vmem:[%s2070_s4] ss:$0 sm:$0xff] }
  0x3f   : > { %1502 = vmatmul.mubr.msk.f32.gmra.mxu1 %vm507_vm1, %v487_v14  ;;  %1456 = vmatprep.mubr.msk.f32.mxu0 %vm507_vm1, %v456_v15  ;;  %v464_v7 = vmax.f32 %v400_v0, 0.0  ;;  %v496_v8 = vmax.f32 %v432_v1, 0.0 }
  0x40   : > { %1504 = vmatprep.mubr.msk.f32.mxu1 %vm507_vm1, %v488_v19  ;;  %v465_v9 = vmax.f32 %v401_v6, 0.0  ;;  %v497_v10 = vmax.f32 %v433_v2, 0.0 }
  0x42   : > { %1457 = vmatmul.mubr.msk.f32.gmra.mxu0 %vm507_vm1, %v457_v26 }
  0x43   : > { %1505 = vmatmul.mubr.msk.f32.gmra.mxu1 %vm507_vm1, %v489_v30  ;;  %1459 = vmatprep.mubr.msk.f32.mxu0 %vm507_vm1, %v458_v35 }
  0x44   : > { %1507 = vmatprep.mubr.msk.f32.mxu1 %vm507_vm1, %v490_v36 }
  0x46   : > { %1460 = vmatmul.mubr.msk.f32.gmra.mxu0 %vm507_vm1, %v459_v42 }
  0x47   : > { %1508 = vmatmul.mubr.msk.f32.gmra.mxu1 %vm507_vm1, %v491_v43  ;;  %1462 = vmatprep.mubr.msk.f32.mxu0 %vm507_vm1, %v460_v46 }
  0x48   : > { %1510 = vmatprep.mubr.msk.f32.mxu1 %vm507_vm1, %v492_v50 }
  0x4a   : > { %1463 = vmatmul.mubr.msk.f32.gmra.mxu0 %vm507_vm1, %v461_v56 }
  0x4b   : > { %1511 = vmatmul.mubr.msk.f32.gmra.mxu1 %vm507_vm1, %v493_v58  ;;  %1465 = vmatprep.mubr.msk.f32.mxu0 %vm507_vm1, %v462_v62 }
  0x4c   : > { %1513 = vmatprep.mubr.msk.f32.mxu1 %vm507_vm1, %v494_v63 }
  0x4e   : > { %1466 = vmatmul.mubr.msk.f32.gmra.mxu0 %vm507_vm1, %v463_v4 }
  0x4f   : > { %1514 = vmatmul.mubr.msk.f32.gmra.mxu1 %vm507_vm1, %v495_v5  ;;  %1468 = vmatprep.mubr.msk.f32.mxu0 %vm507_vm1, %v464_v7 }
  0x50   : > { %1516 = vmatprep.mubr.msk.f32.mxu1 %vm507_vm1, %v496_v8 }
  0x52   : > { %1469 = vmatmul.mubr.msk.f32.gmra.mxu0 %vm507_vm1, %v465_v9 }
  0x53   : > { %1517 = vmatmul.mubr.msk.f32.gmra.mxu1 %vm507_vm1, %v497_v10 }
  0xd6   : > { %v1425_v11 = vpop.f32.mrf.mxu0 }
  0xd7   : > { %v1473_v12 = vpop.f32.mrf.mxu1  ;;  %v776_v13 = vadd.f32 %v1425_v11, %v1862_v3 }
  0xd8   : > { %v936_v14 = vadd.f32 %v1473_v12, %v1862_v3  ;;  %v770_v15 = vpop.f32.mrf.mxu0 }
  0xd9   : > { %v930_v16 = vpop.f32.mrf.mxu1  ;;  %v1090_v17 = vmax.f32 %v776_v13, 0.0  ;;  %v771_v19 = vadd.f32 %v1862_v3, %v770_v15 }
  0xda   : > { %v1122_v18 = vmax.f32 %v936_v14, 0.0  ;;  %v931_v20 = vadd.f32 %v1862_v3, %v930_v16  ;;  %v1428_v21 = vpop.f32.mrf.mxu0 }
  0xdb   : > { %v1476_v22 = vpop.f32.mrf.mxu1  ;;  %1155 = vst.msk [vmem:[%s1871_s12 + $0x8] sm:$0xff] %vm1153_vm2, %v1090_v17  ;;  %v1089_v23 = vmax.f32 %v771_v19, 0.0  ;;  %v786_v25 = vadd.f32 %v1428_v21, %v1862_v3 }
  0xdc   : > { %1187 = vst.msk [vmem:[%s1871_s12 + $0x108] sm:$0xff] %vm1153_vm2, %v1122_v18  ;;  %v1121_v24 = vmax.f32 %v931_v20, 0.0  ;;  %v946_v26 = vadd.f32 %v1476_v22, %v1862_v3  ;;  %v780_v27 = vpop.f32.mrf.mxu0 }
  0xdd   : > { %v940_v28 = vpop.f32.mrf.mxu1  ;;  %1154 = vst.msk [vmem:[%s1871_s12] sm:$0xff] %vm1153_vm2, %v1089_v23  ;;  %v1092_v29 = vmax.f32 %v786_v25, 0.0  ;;  %v781_v31 = vadd.f32 %v1862_v3, %v780_v27 }
  0xde   : > { %1186 = vst.msk [vmem:[%s1871_s12 + $0x100] sm:$0xff] %vm1153_vm2, %v1121_v24  ;;  %v1124_v30 = vmax.f32 %v946_v26, 0.0  ;;  %v941_v32 = vadd.f32 %v1862_v3, %v940_v28  ;;  %v1431_v33 = vpop.f32.mrf.mxu0 }
  0xdf   : > { %v1479_v34 = vpop.f32.mrf.mxu1  ;;  %1157 = vst.msk [vmem:[%s1871_s12 + $0x18] sm:$0xff] %vm1153_vm2, %v1092_v29  ;;  %v1091_v35 = vmax.f32 %v781_v31, 0.0  ;;  %v796_v37 = vadd.f32 %v1431_v33, %v1862_v3 }
  0xe0   : > { %1189 = vst.msk [vmem:[%s1871_s12 + $0x118] sm:$0xff] %vm1153_vm2, %v1124_v30  ;;  %v1123_v36 = vmax.f32 %v941_v32, 0.0  ;;  %v956_v38 = vadd.f32 %v1479_v34, %v1862_v3  ;;  %v790_v39 = vpop.f32.mrf.mxu0 }
  0xe1   : > { %v950_v40 = vpop.f32.mrf.mxu1  ;;  %1156 = vst.msk [vmem:[%s1871_s12 + $0x10] sm:$0xff] %vm1153_vm2, %v1091_v35  ;;  %v1094_v41 = vmax.f32 %v796_v37, 0.0  ;;  %v791_v43 = vadd.f32 %v1862_v3, %v790_v39 }
  0xe2   : > { %1188 = vst.msk [vmem:[%s1871_s12 + $0x110] sm:$0xff] %vm1153_vm2, %v1123_v36  ;;  %v1126_v42 = vmax.f32 %v956_v38, 0.0  ;;  %v951_v44 = vadd.f32 %v1862_v3, %v950_v40  ;;  %v1434_v45 = vpop.f32.mrf.mxu0 }
  0xe3   : > { %v1482_v46 = vpop.f32.mrf.mxu1  ;;  %1159 = vst.msk [vmem:[%s1871_s12 + $0x28] sm:$0xff] %vm1153_vm2, %v1094_v41  ;;  %v1093_v47 = vmax.f32 %v791_v43, 0.0  ;;  %v806_v49 = vadd.f32 %v1434_v45, %v1862_v3 }
  0xe4   : > { %1191 = vst.msk [vmem:[%s1871_s12 + $0x128] sm:$0xff] %vm1153_vm2, %v1126_v42  ;;  %v1125_v48 = vmax.f32 %v951_v44, 0.0  ;;  %v966_v50 = vadd.f32 %v1482_v46, %v1862_v3  ;;  %v800_v51 = vpop.f32.mrf.mxu0 }
  0xe5   : > { %v960_v52 = vpop.f32.mrf.mxu1  ;;  %1158 = vst.msk [vmem:[%s1871_s12 + $0x20] sm:$0xff] %vm1153_vm2, %v1093_v47  ;;  %v1096_v53 = vmax.f32 %v806_v49, 0.0  ;;  %v801_v55 = vadd.f32 %v1862_v3, %v800_v51 }
  0xe6   : > { %1190 = vst.msk [vmem:[%s1871_s12 + $0x120] sm:$0xff] %vm1153_vm2, %v1125_v48  ;;  %v1128_v54 = vmax.f32 %v966_v50, 0.0  ;;  %v961_v56 = vadd.f32 %v1862_v3, %v960_v52  ;;  %v1437_v57 = vpop.f32.mrf.mxu0 }
  0xe7   : > { %v1485_v58 = vpop.f32.mrf.mxu1  ;;  %1161 = vst.msk [vmem:[%s1871_s12 + $0x38] sm:$0xff] %vm1153_vm2, %v1096_v53  ;;  %v1095_v59 = vmax.f32 %v801_v55, 0.0  ;;  %v816_v61 = vadd.f32 %v1437_v57, %v1862_v3 }
  0xe8   : > { %1193 = vst.msk [vmem:[%s1871_s12 + $0x138] sm:$0xff] %vm1153_vm2, %v1128_v54  ;;  %v1127_v60 = vmax.f32 %v961_v56, 0.0  ;;  %v976_v62 = vadd.f32 %v1485_v58, %v1862_v3  ;;  %v810_v63 = vpop.f32.mrf.mxu0 }
  0xe9   : > { %v970_v0 = vpop.f32.mrf.mxu1  ;;  %1160 = vst.msk [vmem:[%s1871_s12 + $0x30] sm:$0xff] %vm1153_vm2, %v1095_v59  ;;  %v1098_v1 = vmax.f32 %v816_v61, 0.0  ;;  %v811_v5 = vadd.f32 %v1862_v3, %v810_v63 }
  0xea   : > { %1192 = vst.msk [vmem:[%s1871_s12 + $0x130] sm:$0xff] %vm1153_vm2, %v1127_v60  ;;  %v1130_v4 = vmax.f32 %v976_v62, 0.0  ;;  %v971_v6 = vadd.f32 %v1862_v3, %v970_v0  ;;  %v1440_v2 = vpop.f32.mrf.mxu0 }
  0xeb   : > { %v1488_v7 = vpop.f32.mrf.mxu1  ;;  %1163 = vst.msk [vmem:[%s1871_s12 + $0x48] sm:$0xff] %vm1153_vm2, %v1098_v1  ;;  %v1097_v8 = vmax.f32 %v811_v5, 0.0  ;;  %v826_v10 = vadd.f32 %v1440_v2, %v1862_v3 }
  0xec   : > { %1195 = vst.msk [vmem:[%s1871_s12 + $0x148] sm:$0xff] %vm1153_vm2, %v1130_v4  ;;  %v1129_v9 = vmax.f32 %v971_v6, 0.0  ;;  %v986_v11 = vadd.f32 %v1488_v7, %v1862_v3  ;;  %v820_v12 = vpop.f32.mrf.mxu0 }
  0xed   : > { %v980_v13 = vpop.f32.mrf.mxu1  ;;  %1162 = vst.msk [vmem:[%s1871_s12 + $0x40] sm:$0xff] %vm1153_vm2, %v1097_v8  ;;  %v1100_v14 = vmax.f32 %v826_v10, 0.0  ;;  %v821_v16 = vadd.f32 %v1862_v3, %v820_v12 }
  0xee   : > { %1194 = vst.msk [vmem:[%s1871_s12 + $0x140] sm:$0xff] %vm1153_vm2, %v1129_v9  ;;  %v1132_v15 = vmax.f32 %v986_v11, 0.0  ;;  %v981_v17 = vadd.f32 %v1862_v3, %v980_v13  ;;  %v1443_v18 = vpop.f32.mrf.mxu0 }
  0xef   : > { %v1491_v19 = vpop.f32.mrf.mxu1  ;;  %1165 = vst.msk [vmem:[%s1871_s12 + $0x58] sm:$0xff] %vm1153_vm2, %v1100_v14  ;;  %v1099_v20 = vmax.f32 %v821_v16, 0.0  ;;  %v836_v22 = vadd.f32 %v1443_v18, %v1862_v3 }
  0xf0   : > { %1197 = vst.msk [vmem:[%s1871_s12 + $0x158] sm:$0xff] %vm1153_vm2, %v1132_v15  ;;  %v1131_v21 = vmax.f32 %v981_v17, 0.0  ;;  %v996_v23 = vadd.f32 %v1491_v19, %v1862_v3  ;;  %v830_v24 = vpop.f32.mrf.mxu0 }
  0xf1   : > { %v990_v25 = vpop.f32.mrf.mxu1  ;;  %1164 = vst.msk [vmem:[%s1871_s12 + $0x50] sm:$0xff] %vm1153_vm2, %v1099_v20  ;;  %v1102_v26 = vmax.f32 %v836_v22, 0.0  ;;  %v831_v28 = vadd.f32 %v1862_v3, %v830_v24 }
  0xf2   : > { %1196 = vst.msk [vmem:[%s1871_s12 + $0x150] sm:$0xff] %vm1153_vm2, %v1131_v21  ;;  %v1134_v27 = vmax.f32 %v996_v23, 0.0  ;;  %v991_v29 = vadd.f32 %v1862_v3, %v990_v25  ;;  %v1446_v30 = vpop.f32.mrf.mxu0 }
  0xf3   : > { %v1494_v31 = vpop.f32.mrf.mxu1  ;;  %1167 = vst.msk [vmem:[%s1871_s12 + $0x68] sm:$0xff] %vm1153_vm2, %v1102_v26  ;;  %v1101_v32 = vmax.f32 %v831_v28, 0.0  ;;  %v846_v34 = vadd.f32 %v1446_v30, %v1862_v3 }
  0xf4   : > { %1199 = vst.msk [vmem:[%s1871_s12 + $0x168] sm:$0xff] %vm1153_vm2, %v1134_v27  ;;  %v1133_v33 = vmax.f32 %v991_v29, 0.0  ;;  %v1006_v35 = vadd.f32 %v1494_v31, %v1862_v3  ;;  %v840_v36 = vpop.f32.mrf.mxu0 }
  0xf5   : > { %v1000_v37 = vpop.f32.mrf.mxu1  ;;  %1166 = vst.msk [vmem:[%s1871_s12 + $0x60] sm:$0xff] %vm1153_vm2, %v1101_v32  ;;  %v1104_v38 = vmax.f32 %v846_v34, 0.0  ;;  %v841_v40 = vadd.f32 %v1862_v3, %v840_v36 }
  0xf6   : > { %1198 = vst.msk [vmem:[%s1871_s12 + $0x160] sm:$0xff] %vm1153_vm2, %v1133_v33  ;;  %v1136_v39 = vmax.f32 %v1006_v35, 0.0  ;;  %v1001_v41 = vadd.f32 %v1862_v3, %v1000_v37  ;;  %v1449_v42 = vpop.f32.mrf.mxu0 }
  0xf7   : > { %v1497_v43 = vpop.f32.mrf.mxu1  ;;  %1169 = vst.msk [vmem:[%s1871_s12 + $0x78] sm:$0xff] %vm1153_vm2, %v1104_v38  ;;  %v1103_v44 = vmax.f32 %v841_v40, 0.0  ;;  %v856_v46 = vadd.f32 %v1449_v42, %v1862_v3 }
  0xf8   : > { %1201 = vst.msk [vmem:[%s1871_s12 + $0x178] sm:$0xff] %vm1153_vm2, %v1136_v39  ;;  %v1135_v45 = vmax.f32 %v1001_v41, 0.0  ;;  %v1016_v47 = vadd.f32 %v1497_v43, %v1862_v3  ;;  %v850_v48 = vpop.f32.mrf.mxu0 }
  0xf9   : > { %v1010_v49 = vpop.f32.mrf.mxu1  ;;  %1168 = vst.msk [vmem:[%s1871_s12 + $0x70] sm:$0xff] %vm1153_vm2, %v1103_v44  ;;  %v1106_v50 = vmax.f32 %v856_v46, 0.0  ;;  %v851_v52 = vadd.f32 %v1862_v3, %v850_v48 }
  0xfa   : > { %1200 = vst.msk [vmem:[%s1871_s12 + $0x170] sm:$0xff] %vm1153_vm2, %v1135_v45  ;;  %v1138_v51 = vmax.f32 %v1016_v47, 0.0  ;;  %v1011_v53 = vadd.f32 %v1862_v3, %v1010_v49  ;;  %v1452_v54 = vpop.f32.mrf.mxu0 }
  0xfb   : > { %v1500_v55 = vpop.f32.mrf.mxu1  ;;  %1171 = vst.msk [vmem:[%s1871_s12 + $0x88] sm:$0xff] %vm1153_vm2, %v1106_v50  ;;  %v1105_v56 = vmax.f32 %v851_v52, 0.0  ;;  %v866_v58 = vadd.f32 %v1452_v54, %v1862_v3 }
  0xfc   : > { %1203 = vst.msk [vmem:[%s1871_s12 + $0x188] sm:$0xff] %vm1153_vm2, %v1138_v51  ;;  %v1137_v57 = vmax.f32 %v1011_v53, 0.0  ;;  %v1026_v59 = vadd.f32 %v1500_v55, %v1862_v3  ;;  %v860_v60 = vpop.f32.mrf.mxu0 }
  0xfd   : > { %v1020_v61 = vpop.f32.mrf.mxu1  ;;  %1170 = vst.msk [vmem:[%s1871_s12 + $0x80] sm:$0xff] %vm1153_vm2, %v1105_v56  ;;  %v1108_v62 = vmax.f32 %v866_v58, 0.0  ;;  %v861_v0 = vadd.f32 %v1862_v3, %v860_v60 }
  0xfe   : > { %1202 = vst.msk [vmem:[%s1871_s12 + $0x180] sm:$0xff] %vm1153_vm2, %v1137_v57  ;;  %v1140_v63 = vmax.f32 %v1026_v59, 0.0  ;;  %v1021_v1 = vadd.f32 %v1862_v3, %v1020_v61  ;;  %v1455_v4 = vpop.f32.mrf.mxu0 }
  0xff   : > { %v1503_v5 = vpop.f32.mrf.mxu1  ;;  %1173 = vst.msk [vmem:[%s1871_s12 + $0x98] sm:$0xff] %vm1153_vm2, %v1108_v62  ;;  %v1107_v6 = vmax.f32 %v861_v0, 0.0  ;;  %v876_v7 = vadd.f32 %v1455_v4, %v1862_v3 }
 0x100   : > { %1205 = vst.msk [vmem:[%s1871_s12 + $0x198] sm:$0xff] %vm1153_vm2, %v1140_v63  ;;  %v1139_v2 = vmax.f32 %v1021_v1, 0.0  ;;  %v1036_v8 = vadd.f32 %v1503_v5, %v1862_v3  ;;  %v870_v9 = vpop.f32.mrf.mxu0 }
 0x101   : > { %v1030_v10 = vpop.f32.mrf.mxu1  ;;  %1172 = vst.msk [vmem:[%s1871_s12 + $0x90] sm:$0xff] %vm1153_vm2, %v1107_v6  ;;  %v1110_v11 = vmax.f32 %v876_v7, 0.0  ;;  %v871_v13 = vadd.f32 %v1862_v3, %v870_v9 }
 0x102   : > { %1204 = vst.msk [vmem:[%s1871_s12 + $0x190] sm:$0xff] %vm1153_vm2, %v1139_v2  ;;  %v1142_v12 = vmax.f32 %v1036_v8, 0.0  ;;  %v1031_v14 = vadd.f32 %v1862_v3, %v1030_v10  ;;  %v1458_v15 = vpop.f32.mrf.mxu0 }
 0x103   : > { %v1506_v16 = vpop.f32.mrf.mxu1  ;;  %1175 = vst.msk [vmem:[%s1871_s12 + $0xa8] sm:$0xff] %vm1153_vm2, %v1110_v11  ;;  %v1109_v17 = vmax.f32 %v871_v13, 0.0  ;;  %v886_v19 = vadd.f32 %v1458_v15, %v1862_v3 }
 0x104   : > { %1207 = vst.msk [vmem:[%s1871_s12 + $0x1a8] sm:$0xff] %vm1153_vm2, %v1142_v12  ;;  %v1141_v18 = vmax.f32 %v1031_v14, 0.0  ;;  %v1046_v20 = vadd.f32 %v1506_v16, %v1862_v3  ;;  %v880_v21 = vpop.f32.mrf.mxu0 }
 0x105   : > { %v1040_v22 = vpop.f32.mrf.mxu1  ;;  %1174 = vst.msk [vmem:[%s1871_s12 + $0xa0] sm:$0xff] %vm1153_vm2, %v1109_v17  ;;  %v1112_v23 = vmax.f32 %v886_v19, 0.0  ;;  %v881_v25 = vadd.f32 %v1862_v3, %v880_v21 }
 0x106   : > { %1206 = vst.msk [vmem:[%s1871_s12 + $0x1a0] sm:$0xff] %vm1153_vm2, %v1141_v18  ;;  %v1144_v24 = vmax.f32 %v1046_v20, 0.0  ;;  %v1041_v26 = vadd.f32 %v1862_v3, %v1040_v22  ;;  %v1461_v27 = vpop.f32.mrf.mxu0 }
 0x107   : > { %v1509_v28 = vpop.f32.mrf.mxu1  ;;  %1177 = vst.msk [vmem:[%s1871_s12 + $0xb8] sm:$0xff] %vm1153_vm2, %v1112_v23  ;;  %v1111_v29 = vmax.f32 %v881_v25, 0.0  ;;  %v896_v31 = vadd.f32 %v1461_v27, %v1862_v3 }
 0x108   : > { %1209 = vst.msk [vmem:[%s1871_s12 + $0x1b8] sm:$0xff] %vm1153_vm2, %v1144_v24  ;;  %v1143_v30 = vmax.f32 %v1041_v26, 0.0  ;;  %v1056_v32 = vadd.f32 %v1509_v28, %v1862_v3  ;;  %v890_v33 = vpop.f32.mrf.mxu0 }
 0x109   : > { %v1050_v34 = vpop.f32.mrf.mxu1  ;;  %1176 = vst.msk [vmem:[%s1871_s12 + $0xb0] sm:$0xff] %vm1153_vm2, %v1111_v29  ;;  %v1114_v35 = vmax.f32 %v896_v31, 0.0  ;;  %v891_v37 = vadd.f32 %v1862_v3, %v890_v33 }
 0x10a   : > { %1208 = vst.msk [vmem:[%s1871_s12 + $0x1b0] sm:$0xff] %vm1153_vm2, %v1143_v30  ;;  %v1146_v36 = vmax.f32 %v1056_v32, 0.0  ;;  %v1051_v38 = vadd.f32 %v1862_v3, %v1050_v34  ;;  %v1464_v39 = vpop.f32.mrf.mxu0 }
 0x10b   : > { %v1512_v40 = vpop.f32.mrf.mxu1  ;;  %1179 = vst.msk [vmem:[%s1871_s12 + $0xc8] sm:$0xff] %vm1153_vm2, %v1114_v35  ;;  %v1113_v41 = vmax.f32 %v891_v37, 0.0  ;;  %v906_v43 = vadd.f32 %v1464_v39, %v1862_v3 }
 0x10c   : > { %1211 = vst.msk [vmem:[%s1871_s12 + $0x1c8] sm:$0xff] %vm1153_vm2, %v1146_v36  ;;  %v1145_v42 = vmax.f32 %v1051_v38, 0.0  ;;  %v1066_v44 = vadd.f32 %v1512_v40, %v1862_v3  ;;  %v900_v45 = vpop.f32.mrf.mxu0 }
 0x10d   : > { %v1060_v46 = vpop.f32.mrf.mxu1  ;;  %1178 = vst.msk [vmem:[%s1871_s12 + $0xc0] sm:$0xff] %vm1153_vm2, %v1113_v41  ;;  %v1116_v47 = vmax.f32 %v906_v43, 0.0  ;;  %v901_v49 = vadd.f32 %v1862_v3, %v900_v45 }
 0x10e   : > { %1210 = vst.msk [vmem:[%s1871_s12 + $0x1c0] sm:$0xff] %vm1153_vm2, %v1145_v42  ;;  %v1148_v48 = vmax.f32 %v1066_v44, 0.0  ;;  %v1061_v50 = vadd.f32 %v1862_v3, %v1060_v46  ;;  %v1467_v51 = vpop.f32.mrf.mxu0 }
 0x10f   : > { %v1515_v52 = vpop.f32.mrf.mxu1  ;;  %1181 = vst.msk [vmem:[%s1871_s12 + $0xd8] sm:$0xff] %vm1153_vm2, %v1116_v47  ;;  %v1115_v53 = vmax.f32 %v901_v49, 0.0  ;;  %v916_v55 = vadd.f32 %v1467_v51, %v1862_v3 }
 0x110   : > { %1213 = vst.msk [vmem:[%s1871_s12 + $0x1d8] sm:$0xff] %vm1153_vm2, %v1148_v48  ;;  %v1147_v54 = vmax.f32 %v1061_v50, 0.0  ;;  %v1076_v56 = vadd.f32 %v1515_v52, %v1862_v3  ;;  %v910_v57 = vpop.f32.mrf.mxu0 }
 0x111   : > { %v1070_v58 = vpop.f32.mrf.mxu1  ;;  %1180 = vst.msk [vmem:[%s1871_s12 + $0xd0] sm:$0xff] %vm1153_vm2, %v1115_v53  ;;  %v1118_v59 = vmax.f32 %v916_v55, 0.0  ;;  %v911_v61 = vadd.f32 %v1862_v3, %v910_v57 }
 0x112   : > { %1212 = vst.msk [vmem:[%s1871_s12 + $0x1d0] sm:$0xff] %vm1153_vm2, %v1147_v54  ;;  %v1150_v60 = vmax.f32 %v1076_v56, 0.0  ;;  %v1071_v62 = vadd.f32 %v1862_v3, %v1070_v58  ;;  %v1470_v63 = vpop.f32.mrf.mxu0 }
 0x113   : > { %v1518_v0 = vpop.f32.mrf.mxu1  ;;  %1183 = vst.msk [vmem:[%s1871_s12 + $0xe8] sm:$0xff] %vm1153_vm2, %v1118_v59  ;;  %v1117_v1 = vmax.f32 %v911_v61, 0.0  ;;  %v926_v5 = vadd.f32 %v1470_v63, %v1862_v3 }
 0x114   : > { %1215 = vst.msk [vmem:[%s1871_s12 + $0x1e8] sm:$0xff] %vm1153_vm2, %v1150_v60  ;;  %v1149_v4 = vmax.f32 %v1071_v62, 0.0  ;;  %v1086_v6 = vadd.f32 %v1518_v0, %v1862_v3  ;;  %v920_v2 = vpop.f32.mrf.mxu0 }
 0x115   : > { %v1080_v7 = vpop.f32.mrf.mxu1  ;;  %1182 = vst.msk [vmem:[%s1871_s12 + $0xe0] sm:$0xff] %vm1153_vm2, %v1117_v1  ;;  %v1120_v8 = vmax.f32 %v926_v5, 0.0  ;;  %v921_v10 = vadd.f32 %v1862_v3, %v920_v2 }
 0x116   : > { %1214 = vst.msk [vmem:[%s1871_s12 + $0x1e0] sm:$0xff] %vm1153_vm2, %v1149_v4  ;;  %v1152_v9 = vmax.f32 %v1086_v6, 0.0  ;;  %v1081_v11 = vadd.f32 %v1862_v3, %v1080_v7 }
 0x117   : > { %1185 = vst.msk [vmem:[%s1871_s12 + $0xf8] sm:$0xff] %vm1153_vm2, %v1120_v8  ;;  %v1119_v12 = vmax.f32 %v921_v10, 0.0 }
 0x118   : > { %1217 = vst.msk [vmem:[%s1871_s12 + $0x1f8] sm:$0xff] %vm1153_vm2, %v1152_v9  ;;  %v1151_v13 = vmax.f32 %v1081_v11, 0.0 }
 0x119   : > { %1184 = vst.msk [vmem:[%s1871_s12 + $0xf0] sm:$0xff] %vm1153_vm2, %v1119_v12 }
 0x11a   : > { %1216 = vst.msk [vmem:[%s1871_s12 + $0x1f0] sm:$0xff] %vm1153_vm2, %v1151_v13 }
 0x11b PF: > { %s15_s18 = sadd.s32 1, %s1537_s18  }
 0x11c   : > { %p12_p4 = scmp.ge.s32.totalorder %s15_s18, 4  }
 0x11e   :  { %14 = sbr.rel (!%p12_p4) target bundleno = 1 (0x1), region = 70 }

</bundles_post_ra>
